<compile_context>
chip_gen: v7x
topology: tpu7x:2x2x1
jax: 0.10.0
libtpu: 0.0.40
codegen_flags: <defaults>
</compile_context>

<pallas_src>
import math

import jax
import jax.numpy as jnp
from jax.experimental import pallas as pl
from jax.experimental.pallas import tpu as pltpu

# ---- qm9 constants (as in TIDFlow.__init__ for data_name == 'qm9') ----------
B_N_TYPE = 4
A_N_NODE = 9
A_N_TYPE = 5
B_SIZE = A_N_NODE * A_N_NODE * B_N_TYPE   # 324
A_SIZE = A_N_NODE * A_N_TYPE              # 45
LOG2PI = math.log(2.0 * math.pi)
LOG2 = math.log(2.0)

_VMEM_LIMIT_BYTES = 32 * 1024 * 1024      # scoped-VMEM limit, safe on v5e/v6e/v7x
_BLOCK_VMEM_BUDGET = 16 * 1024 * 1024     # modeled bytes (dbl-buffered I/O + intermediates)
                                          # -> 2x headroom under the 32 MiB limit


def _compiler_params():
    return pltpu.CompilerParams(
        dimension_semantics=("parallel",),
        vmem_limit_bytes=_VMEM_LIMIT_BYTES,
    )


def _pick_row_block(n_rows, live_bytes_per_row, *, block_rows=None, min_grid_steps=2):
    """Rows per grid step.

    Sized so the modeled VMEM footprint (double-buffered input+output blocks
    plus full-block intermediates, `live_bytes_per_row` per row) stays within
    _BLOCK_VMEM_BUDGET; rounded to a multiple of 8 for (8,128) tiling.  When
    the whole batch fits in one block, it is split so the grid has at least
    `min_grid_steps` steps (megacore sharding on v7x + pipeline overlap),
    as long as blocks can stay multiples of 8."""
    if block_rows is not None:
        block_rows = int(block_rows)
        if block_rows >= n_rows:
            return n_rows                          # full dim == always legal
        return max(8, (block_rows // 8) * 8)
    rows = _BLOCK_VMEM_BUDGET // max(1, int(live_bytes_per_row))
    rows = max(8, (int(rows) // 8) * 8)
    if n_rows > rows:
        return rows
    if min_grid_steps > 1 and n_rows >= 8 * min_grid_steps:
        split = -(-n_rows // min_grid_steps)       # ceil(n_rows / min_grid_steps)
        split = -(-split // 8) * 8                 # round up to a multiple of 8
        return min(rows, split)
    return n_rows                                  # single full-dim block


# =============================================================================
# rescale_adj(adj, type='all') as a lane-dense Pallas kernel
#   num_neighbors[b, j] = adj.sum(dim=(1, 2))[b, j];  inv with inf -> 0
#   adj'[b, c, i, j]    = inv[b, j] * adj[b, c, i, j]
# =============================================================================
def _rescale_all_kernel(a_ref, p_ref, pt_ref, o_ref):
    a = a_ref[...]                                       # (rows, D), native float dtype
    # Degree via ONE bf16 MXU matmul against the one-hot column-class matrix
    # P[k, j] = 1 iff (k % n_node) == j.  bf16 is exact for 0/1 adjacency
    # entries and integer degrees <= 36; the MXU accumulates in f32.
    deg = jnp.dot(a.astype(jnp.bfloat16), p_ref[...],
                  preferred_element_type=jnp.float32)    # (rows, n_node)
    # Zero-test + reciprocal on the small (rows, n_node) degree: 36x fewer
    # EUP/VPU elements than doing it on the broadcast (rows, D).
    inv = jnp.where(deg == 0.0, 0.0, 1.0 / deg)          # f32, exact
    # Broadcast back to the (c, i, j)-flattened layout (column k -> j = k % n).
    # pt is one-hot f32 and inv stays f32, so the matmul is bit-exact.
    # TODO(synk): A/B against jnp.tile(inv, (1, D // n_node)) (XLU lane
    # replication, frees the MXU) per the v5e review item; the matmul form is
    # kept here because it is the known-good lowering.
    inv_full = jnp.dot(inv, pt_ref[...], preferred_element_type=jnp.float32)  # (rows, D)
    o_ref[...] = (a.astype(jnp.float32) * inv_full).astype(o_ref.dtype)


def rescale_adj(adj, type='all', *, block_rows=None, out_dtype=None):
    adj = jnp.asarray(adj)
    if not jnp.issubdtype(adj.dtype, jnp.floating):
        adj = adj.astype(jnp.float32)
    if out_dtype is None:
        # Matches the reference (f32 degree * adj promotes to f32); pass
        # out_dtype=jnp.bfloat16 to halve writeback for bf16 adjacencies.
        out_dtype = jnp.float32

    if type == 'view':
        # Not on the model's hot path; plain XLA is adequate here.
        out_degree = jnp.sum(adj, axis=-1)
        inv = jnp.where(out_degree == 0.0, 0.0, 1.0 / out_degree)
        return inv[..., None] * adj

    B, C, N, N2 = adj.shape
    assert N == N2, "adjacency must be square over nodes"
    D = C * N * N
    a2 = adj.reshape(B, D)                   # free (contiguous) reshape -> lane-dense rows

    # One-hot column-class matrices: P[k, j] = 1 iff (k % N) == j.
    k = jnp.arange(D, dtype=jnp.int32)
    j = jnp.arange(N, dtype=jnp.int32)
    p = (k[:, None] % N == j[None, :]).astype(jnp.bfloat16)   # (D, N) for the bf16 MXU pass
    pt = (j[:, None] == (k[None, :] % N)).astype(jnp.float32)  # (N, D) for the exact broadcast-back

    in_b = jnp.dtype(a2.dtype).itemsize
    out_b = jnp.dtype(out_dtype).itemsize
    # dbl-buffered in + out, plus bf16 copy (2B) + f32 inv_full (4B) + f32 product (4B)
    live = D * (2 * in_b + 2 * out_b + 10)
    rows = _pick_row_block(B, live, block_rows=block_rows)
    grid = (pl.cdiv(B, rows),)

    out2 = pl.pallas_call(
        _rescale_all_kernel,
        out_shape=jax.ShapeDtypeStruct((B, D), out_dtype),
        grid=grid,
        in_specs=[
            pl.BlockSpec((rows, D), lambda i: (i, 0)),
            pl.BlockSpec((D, N), lambda i: (0, 0)),     # resident across the grid
            pl.BlockSpec((N, D), lambda i: (0, 0)),     # resident across the grid
        ],
        out_specs=pl.BlockSpec((rows, D), lambda i: (i, 0)),
        compiler_params=_compiler_params(),
    )(a2, p, pt)
    return out2.reshape(B, C, N, N)


# =============================================================================
# gaussian_nll (generic) as Pallas kernels
#   row-sum-only variant for reduce='sum'; elementwise variant for reduce='no'
# =============================================================================
def _nll_loss_block(x, mean_row, lnvar_row):
    # ln_var enters only via a (1, D) row: exp / constant work is O(D) per block.
    half_prec = 0.5 * jnp.exp(-lnvar_row)              # (1, D)
    const = 0.5 * (lnvar_row + LOG2PI)                 # (1, D)
    diff = x if mean_row is None else x - mean_row     # row broadcast over sublanes
    return const + diff * diff * half_prec


def _make_nll_kernel(with_mean, rowsum_only):
    if with_mean:
        def kernel(x_ref, mean_ref, lnvar_ref, out_ref):
            loss = _nll_loss_block(x_ref[...].astype(jnp.float32),
                                   mean_ref[...], lnvar_ref[...])
            if rowsum_only:
                out_ref[...] = jnp.sum(loss, axis=1, keepdims=True)
            else:
                out_ref[...] = loss
    else:
        def kernel(x_ref, lnvar_ref, out_ref):
            loss = _nll_loss_block(x_ref[...].astype(jnp.float32),
                                   None, lnvar_ref[...])
            if rowsum_only:
                out_ref[...] = jnp.sum(loss, axis=1, keepdims=True)
            else:
                out_ref[...] = loss
    return kernel


def _as_aux_rows(v, n_rows, n_cols, rows_blk):
    """(array, BlockSpec) for mean / ln_var without materializing (B, D) in HBM
    when the value does not vary across rows (the model's only use case).
    NOTE: genuinely per-row parameters fall back to a full (B, D) broadcast."""
    v = jnp.asarray(v, jnp.float32)
    if v.ndim == 0:
        v = v.reshape(1, 1)
    elif v.ndim == 1:
        v = v.reshape(1, -1)
    else:
        v = v.reshape(-1, v.shape[-1])
    if v.shape[0] == 1:
        row = jnp.broadcast_to(v, (1, n_cols))
        return row, pl.BlockSpec((1, n_cols), lambda i: (0, 0))
    full = jnp.broadcast_to(v, (n_rows, n_cols))
    return full, pl.BlockSpec((rows_blk, n_cols), lambda i: (i, 0))


def _gaussian_nll_2d(x2d, mean, ln_var, *, rowsum_only, block_rows=None):
    """x2d: (B, D). mean may be None (treated as zero, no extra input stream)."""
    x2d = jnp.asarray(x2d)
    if not jnp.issubdtype(x2d.dtype, jnp.floating):
        x2d = x2d.astype(jnp.float32)
    B, D = x2d.shape
    x_b = jnp.dtype(x2d.dtype).itemsize
    out_per_row = 4 if rowsum_only else 4 * D
    # dbl-buffered in + out, plus ~3 f32 full-block intermediates (diff, sq, loss)
    live = 2 * D * x_b + 2 * out_per_row + 3 * 4 * D
    rows = _pick_row_block(B, live, block_rows=block_rows)
    grid = (pl.cdiv(B, rows),)

    operands = [x2d]
    in_specs = [pl.BlockSpec((rows, D), lambda i: (i, 0))]
    with_mean = mean is not None
    if with_mean:
        mean_arr, mean_spec = _as_aux_rows(mean, B, D, rows)
        operands.append(mean_arr)
        in_specs.append(mean_spec)
    lnvar_arr, lnvar_spec = _as_aux_rows(ln_var, B, D, rows)
    operands.append(lnvar_arr)
    in_specs.append(lnvar_spec)

    if rowsum_only:
        out_shape = jax.ShapeDtypeStruct((B, 1), jnp.float32)
        out_spec = pl.BlockSpec((rows, 1), lambda i: (i, 0))
    else:
        out_shape = jax.ShapeDtypeStruct((B, D), jnp.float32)
        out_spec = pl.BlockSpec((rows, D), lambda i: (i, 0))

    return pl.pallas_call(
        _make_nll_kernel(with_mean, rowsum_only),
        out_shape=out_shape,
        grid=grid,
        in_specs=in_specs,
        out_specs=out_spec,
        compiler_params=_compiler_params(),
    )(*operands)


def _is_size_one(v):
    if v is None:
        return True
    return jnp.asarray(v).size == 1


def _lane_dense_view(x):
    """2-D view of x with a lane-dense last dim (multiple of 128) when the total
    size divides; otherwise a plain row-major 2-D view."""
    total = x.size
    for cols in (4096, 2048, 1024, 512, 256, 128):
        if total >= cols and total % cols == 0:
            return x.reshape(total // cols, cols)
    return x.reshape(1, -1) if x.ndim <= 1 else x.reshape(-1, x.shape[-1])


def gaussian_nll(x, mean, ln_var, reduce='sum'):
    if reduce not in ('sum', 'no'):
        raise ValueError(
            "only 'sum' and 'no' are valid for 'reduce', but '%s' is given" % reduce)
    x = jnp.asarray(x)
    orig_shape = x.shape
    if _is_size_one(mean) and _is_size_one(ln_var):
        # Scalar parameters are position-independent: present a lane-dense view
        # so reads and (for reduce='no') stores use full 128-lane vregs.
        x2d = _lane_dense_view(x)
    else:
        x2d = x.reshape(1, -1) if x.ndim <= 1 else x.reshape(-1, x.shape[-1])
    if reduce == 'sum':
        rowsums = _gaussian_nll_2d(x2d, mean, ln_var, rowsum_only=True)
        return jnp.sum(rowsums)
    loss = _gaussian_nll_2d(x2d, mean, ln_var, rowsum_only=False)
    return loss.reshape(orig_shape)


# =============================================================================
# Fused log_prob row-sum kernel: one pallas_call for BOTH latent streams
# (zero mean, scalar ln_var -> params live as hoisted SMEM scalars).
# =============================================================================
def _fused_logprob_kernel(scal_ref, zx_ref, zadj_ref, ox_ref, oadj_ref):
    # scal = [0.5*exp(-ln_var_x),   0.5*(ln_var_x   + log 2pi),
    #         0.5*exp(-ln_var_adj), 0.5*(ln_var_adj + log 2pi)]   (SMEM scalars)
    zx = zx_ref[...].astype(jnp.float32)
    za = zadj_ref[...].astype(jnp.float32)
    ox_ref[...] = (scal_ref[1] * zx.shape[1]
                   + scal_ref[0] * jnp.sum(zx * zx, axis=1, keepdims=True))
    oadj_ref[...] = (scal_ref[3] * za.shape[1]
                     + scal_ref[2] * jnp.sum(za * za, axis=1, keepdims=True))


def _fused_logprob_rowsums(z_x, z_adj, ln_var, *, block_rows=None):
    """Per-row gaussian_nll sums for (z_x, z_adj) with zero mean and scalar
    ln_var, in a single kernel sharing one row grid."""
    z_x = jnp.asarray(z_x)
    z_adj = jnp.asarray(z_adj)
    if not jnp.issubdtype(z_x.dtype, jnp.floating):
        z_x = z_x.astype(jnp.float32)
    if not jnp.issubdtype(z_adj.dtype, jnp.floating):
        z_adj = z_adj.astype(jnp.float32)
    B, d_x = z_x.shape
    B2, d_adj = z_adj.shape
    assert B == B2

    lv = jnp.asarray(ln_var, jnp.float32).reshape(-1)
    lv_adj = lv[0]
    lv_x = lv[1] if lv.shape[0] > 1 else lv[0]     # mirrors the len(ln_var)==2 branch
    scal = jnp.stack([0.5 * jnp.exp(-lv_x), 0.5 * (lv_x + LOG2PI),
                      0.5 * jnp.exp(-lv_adj), 0.5 * (lv_adj + LOG2PI)])   # (4,) f32

    bx = jnp.dtype(z_x.dtype).itemsize
    ba = jnp.dtype(z_adj.dtype).itemsize
    live = 2 * (d_x * bx + d_adj * ba) + 2 * 8 + 4 * (d_x + d_adj)
    rows = _pick_row_block(B, live, block_rows=block_rows)
    grid = (pl.cdiv(B, rows),)

    ox, oadj = pl.pallas_call(
        _fused_logprob_kernel,
        out_shape=(jax.ShapeDtypeStruct((B, 1), jnp.float32),
                   jax.ShapeDtypeStruct((B, 1), jnp.float32)),
        grid=grid,
        in_specs=[
            pl.BlockSpec(memory_space=pltpu.MemorySpace.SMEM),   # scalars, no HBM row stream
            pl.BlockSpec((rows, d_x), lambda i: (i, 0)),
            pl.BlockSpec((rows, d_adj), lambda i: (i, 0)),
        ],
        out_specs=(pl.BlockSpec((rows, 1), lambda i: (i, 0)),
                   pl.BlockSpec((rows, 1), lambda i: (i, 0))),
        compiler_params=_compiler_params(),
    )(scal, z_x, z_adj)
    return ox[:, 0], oadj[:, 0]


# =============================================================================
# TIDFlow (qm9) — parameters & forward / log_prob
# =============================================================================
def init_tidflow_params():
    # learn_dist=True -> ln_var parameter of shape (1,), initialized to zeros.
    return {'ln_var': jnp.zeros((1,), jnp.float32)}


def tidflow_forward(params, adj, x, adj_normalized, training=False):
    """Mirrors TIDFlow.forward in eval mode (training noise branches skipped)."""
    del adj_normalized  # would be consumed by GlowOnGraph (not provided)
    h = x
    # TODO(synk): Glow / GlowOnGraph submodule definitions were not provided with the
    # module source, so the flow transforms are left as identity with zero log-det.
    sum_log_det_jacs_x = jnp.zeros((x.shape[0],), jnp.float32)
    adj_h = adj
    sum_log_det_jacs_adj = jnp.zeros((adj.shape[0],), jnp.float32)
    return [h, adj_h], [sum_log_det_jacs_x, sum_log_det_jacs_adj]


def tidflow_log_prob(params, z, logdet):
    """Mirrors TIDFlow.log_prob using the single fused row-sum NLL kernel."""
    z_x = z[0].reshape(z[0].shape[0], -1)        # (B, a_size)
    z_adj = z[1].reshape(z[1].shape[0], -1)      # (B, b_size)
    a_size = z_x.shape[1]
    b_size = z_adj.shape[1]
    logdet_x = logdet[0] - a_size * LOG2
    logdet_adj = logdet[1] - b_size * LOG2

    # mean is identically zero and ln_var is scalar -> both streams are summed
    # in ONE kernel; ln_var enters as hoisted SMEM scalars.
    x_rows, adj_rows = _fused_logprob_rowsums(z_x, z_adj, params['ln_var'])
    nll_adj = jnp.mean(adj_rows - logdet_adj) / (b_size * LOG2)
    nll_x = jnp.mean(x_rows - logdet_x) / (a_size * LOG2)
    return [nll_x, nll_adj]


if __name__ == "__main__":
    key = jax.random.PRNGKey(0)
    k_adj, k_x, k1, k2, k3, k4 = jax.random.split(key, 6)

    batch = 2
    # adj: (B, 4, 9, 9) sparse-ish binary adjacency, x: (B, 9, 5) one-hot atom types.
    adj = (jax.random.uniform(k_adj, (batch, B_N_TYPE, A_N_NODE, A_N_NODE)) > 0.7
           ).astype(jnp.float32)
    x = jax.nn.one_hot(
        jax.random.randint(k_x, (batch, A_N_NODE), 0, A_N_TYPE), A_N_TYPE
    ).astype(jnp.float32)

    params = init_tidflow_params()

    # rescale_adj (Pallas kernel) -> adj_normalized, as done upstream of forward().
    adj_normalized = rescale_adj(adj)

    # Forward pass (eval mode) and NLL path exercising the fused row-sum kernel.
    out, logdets = tidflow_forward(params, adj, x, adj_normalized, training=False)
    nll_x, nll_adj = tidflow_log_prob(params, out, logdets)

    # reduce='sum' path (generic kernel with explicit mean / ln_var rows).
    total_nll = gaussian_nll(out[0].reshape(batch, -1),
                             jnp.zeros((A_SIZE,), jnp.float32),
                             jnp.zeros((A_SIZE,), jnp.float32),
                             reduce='sum')

    # --- correctness checks vs plain JAX ------------------------------------
    # rescale_adj: default blocks (grid of 2 with a ragged last block) and 8-row blocks.
    adj_big = (jax.random.uniform(k1, (24, B_N_TYPE, A_N_NODE, A_N_NODE)) > 0.6
               ).astype(jnp.float32)
    deg_ref = adj_big.sum(axis=(1, 2))
    ref = jnp.where(deg_ref == 0.0, 0.0, 1.0 / deg_ref)[:, None, None, :] * adj_big
    got_def = rescale_adj(adj_big)                         # grid of 2 (16 + ragged 8)
    got_blk = rescale_adj(adj_big, block_rows=8)           # grid of 3
    assert jnp.allclose(got_def, ref, rtol=1e-4, atol=1e-4)
    assert jnp.allclose(got_blk, ref, rtol=1e-4, atol=1e-4)

    # generic gaussian_nll with vector params (resident (1, D) rows).
    xb = jax.random.normal(k2, (24, A_SIZE), jnp.float32)
    mu = 0.1 * jnp.ones((A_SIZE,), jnp.float32)
    lv = 0.3 * jnp.ones((A_SIZE,), jnp.float32)
    ref_loss = 0.5 * (lv + LOG2PI) + 0.5 * (xb - mu) ** 2 * jnp.exp(-lv)
    got_rows = _gaussian_nll_2d(xb, mu, lv, rowsum_only=True, block_rows=8)[:, 0]
    got_rows_def = _gaussian_nll_2d(xb, mu, lv, rowsum_only=True)[:, 0]
    assert jnp.allclose(got_rows, ref_loss.sum(axis=1), rtol=1e-4, atol=1e-4)
    assert jnp.allclose(got_rows_def, ref_loss.sum(axis=1), rtol=1e-4, atol=1e-4)
    got_no = gaussian_nll(xb, mu, lv, reduce='no')
    assert jnp.allclose(got_no, ref_loss, rtol=1e-4, atol=1e-4)

    # scalar-param lane-dense path (x.size = 1152 = 9 * 128 -> (9, 128) view).
    xc = jax.random.normal(k3, (16, 9, 8), jnp.float32)
    ref_c = 0.5 * (0.2 + LOG2PI) + 0.5 * xc ** 2 * jnp.exp(-0.2)
    got_sum_c = gaussian_nll(xc, 0.0, 0.2, reduce='sum')
    got_no_c = gaussian_nll(xc, 0.0, 0.2, reduce='no')
    assert jnp.allclose(got_sum_c, ref_c.sum(), rtol=1e-4, atol=1e-4)
    assert jnp.allclose(got_no_c, ref_c, rtol=1e-4, atol=1e-4)

    # fused log_prob row-sum kernel (SMEM scalars, two input streams, multi-block grid).
    zx_b = jax.random.normal(k4, (24, A_SIZE), jnp.float32)
    zadj_b = jax.random.normal(k1, (24, B_SIZE), jnp.float32)
    xr, ar = _fused_logprob_rowsums(zx_b, zadj_b, jnp.array([0.3], jnp.float32),
                                    block_rows=8)
    ref_xr = 0.5 * (0.3 + LOG2PI) * A_SIZE + 0.5 * jnp.exp(-0.3) * jnp.sum(zx_b ** 2, axis=1)
    ref_ar = 0.5 * (0.3 + LOG2PI) * B_SIZE + 0.5 * jnp.exp(-0.3) * jnp.sum(zadj_b ** 2, axis=1)
    assert jnp.allclose(xr, ref_xr, rtol=1e-4, atol=1e-4)
    assert jnp.allclose(ar, ref_ar, rtol=1e-4, atol=1e-4)

    # log_prob end-to-end vs plain JAX (ln_var = 0).
    ref_nll_x = jnp.mean(0.5 * LOG2PI * A_SIZE
                         + 0.5 * jnp.sum(out[0].reshape(batch, -1) ** 2, axis=1)
                         - (logdets[0] - A_SIZE * LOG2)) / (A_SIZE * LOG2)
    ref_nll_adj = jnp.mean(0.5 * LOG2PI * B_SIZE
                           + 0.5 * jnp.sum(out[1].reshape(batch, -1) ** 2, axis=1)
                           - (logdets[1] - B_SIZE * LOG2)) / (B_SIZE * LOG2)
    assert jnp.allclose(nll_x, ref_nll_x, rtol=1e-4, atol=1e-4)
    assert jnp.allclose(nll_adj, ref_nll_adj, rtol=1e-4, atol=1e-4)

    jax.block_until_ready((adj_normalized, out[0], out[1], nll_x, nll_adj, total_nll,
                           got_def, got_blk, got_rows, got_rows_def, got_no,
                           got_sum_c, got_no_c, xr, ar))
    print("KERNEL_OK")
</pallas_src>

<mosaic_0001>
module attributes {stable_mosaic.version = 11 : i64} {
  func.func @_rescale_all_kernel(%arg0: i32, %arg1: memref<2x324xf32, #tpu.memory_space<vmem>>, %arg2: memref<324x9xbf16, #tpu.memory_space<vmem>>, %arg3: memref<9x324xf32, #tpu.memory_space<vmem>>, %arg4: memref<2x324xf32, #tpu.memory_space<vmem>>) attributes {dimension_semantics = [#tpu.dimension_semantics<parallel>], iteration_bounds = array<i64: 1>, scalar_prefetch = 0 : i64, scratch_operands = 0 : i64, tpu.core_type = #tpu.core_type<tc>, window_params = [{transform_indices = @transform_0, window_bounds = array<i64: 2, 324>}, {pipeline_mode = #tpu.pipeline_mode<synchronous>, transform_indices = @transform_1, window_bounds = array<i64: 324, 9>}, {pipeline_mode = #tpu.pipeline_mode<synchronous>, transform_indices = @transform_2, window_bounds = array<i64: 9, 324>}, {transform_indices = @transform_3, window_bounds = array<i64: 2, 324>}]} {
    %c0 = arith.constant 0 : index
    %c0_0 = arith.constant 0 : index
    %0 = vector.load %arg1[%c0, %c0_0] : memref<2x324xf32, #tpu.memory_space<vmem>>, vector<2x324xf32>
    %1 = arith.truncf %0 : vector<2x324xf32> to vector<2x324xbf16>
    %c0_1 = arith.constant 0 : index
    %c0_2 = arith.constant 0 : index
    %2 = vector.load %arg2[%c0_1, %c0_2] : memref<324x9xbf16, #tpu.memory_space<vmem>>, vector<324x9xbf16>
    %cst = arith.constant dense<0.000000e+00> : vector<2x9xf32>
    %3 = tpu.matmul %1, %2, %cst {dimension_numbers = #tpu.dot_dimension_numbers<[1], [0], [0], [1], [0, 0, 1, 1], [], []>} : vector<2x324xbf16>, vector<324x9xbf16>, vector<2x9xf32> -> vector<2x9xf32>
    %cst_3 = arith.constant 0.000000e+00 : f32
    %4 = vector.broadcast %cst_3 : f32 to vector<2x9xf32>
    %5 = arith.cmpf oeq, %3, %4 : vector<2x9xf32>
    %cst_4 = arith.constant 1.000000e+00 : f32
    %6 = vector.broadcast %cst_4 : f32 to vector<2x9xf32>
    %7 = arith.divf %6, %3 : vector<2x9xf32>
    %cst_5 = arith.constant 0.000000e+00 : f32
    %8 = vector.broadcast %cst_5 : f32 to vector<2x9xf32>
    %9 = arith.select %5, %8, %7 : vector<2x9xi1>, vector<2x9xf32>
    %c0_6 = arith.constant 0 : index
    %c0_7 = arith.constant 0 : index
    %10 = vector.load %arg3[%c0_6, %c0_7] : memref<9x324xf32, #tpu.memory_space<vmem>>, vector<9x324xf32>
    %cst_8 = arith.constant dense<0.000000e+00> : vector<2x324xf32>
    %11 = tpu.matmul %9, %10, %cst_8 {dimension_numbers = #tpu.dot_dimension_numbers<[1], [0], [0], [1], [0, 0, 1, 1], [], []>} : vector<2x9xf32>, vector<9x324xf32>, vector<2x324xf32> -> vector<2x324xf32>
    %12 = arith.mulf %0, %11 : vector<2x324xf32>
    %c0_9 = arith.constant 0 : index
    %c0_10 = arith.constant 0 : index
    %13 = vector.load %arg4[%c0_9, %c0_10] : memref<2x324xf32, #tpu.memory_space<vmem>>, vector<2x324xf32>
    tpu.vector_store %arg4[%c0_9, %c0_10], %12 {strides = array<i32>} : memref<2x324xf32, #tpu.memory_space<vmem>>, vector<2x324xf32>,
    return
  }
  func.func @transform_0(%arg0: i32) -> (i32, i32) {
    %c0_i32 = arith.constant 0 : i32
    %c0_i32_0 = arith.constant 0 : i32
    return %arg0, %c0_i32 : i32, i32
  }
  func.func @transform_1(%arg0: i32) -> (i32, i32) {
    %c0_i32 = arith.constant 0 : i32
    %c0_i32_0 = arith.constant 0 : i32
    %c0_i32_1 = arith.constant 0 : i32
    return %c0_i32, %c0_i32_0 : i32, i32
  }
  func.func @transform_2(%arg0: i32) -> (i32, i32) {
    %c0_i32 = arith.constant 0 : i32
    %c0_i32_0 = arith.constant 0 : i32
    %c0_i32_1 = arith.constant 0 : i32
    return %c0_i32, %c0_i32_0 : i32, i32
  }
  func.func @transform_3(%arg0: i32) -> (i32, i32) {
    %c0_i32 = arith.constant 0 : i32
    %c0_i32_0 = arith.constant 0 : i32
    return %arg0, %c0_i32 : i32, i32
  }
}

</mosaic_0001>

<bundles_post_ra>
// kernel: tpu_custom_call.1
= control target key start
LH: loop header
LB: loop body
LE: loop exit
PB: predicated region body
PF: predicated region fallthrough
CT: control target
= control target key end

     0   :  { %v640_v2 = vmov 0.0   ;;  %vm641_vm0 = vmmov 0   ;;  %v22_v16 = vlaneseq  ;;  %vm208_vm1 = vcmask 1041408   ;;  %s796_s0 = inlined_call_operand.vmem [shape: f32[2,324], index: 0, kind: input, shape index: {}]   ;;  %s797_s1 = inlined_call_operand.vmem [shape: bf16[324,9], index: 1, kind: input, shape index: {}]   ;;  %s798_s2 = inlined_call_operand.vmem [shape: f32[9,324], index: 2, kind: input, shape index: {}]   ;;  %s799_s3 = inlined_call_operand.hbm [shape: f32[2,324], index: 3, kind: output, shape index: {}]  }
   0x1   :  { %v592_v0 = vld [vmem:[%s797_s1 + $0x40] sm:$0xff]   ;;  %555 = vmatprep.subr.bf16.mxu1 %v640_v2  ;;  %v594_v3 = vld [vmem:[%s797_s1 + $0x48] sm:$0xff]   ;;  %v596_v5 = vld [vmem:[%s797_s1 + $0x50] sm:$0xff]   ;;  %565 = vmatprep.mubr.msk.bf16.mxu1 %vm641_vm0, %v640_v2 }
   0x2   :  { %v593_v1 = vld [vmem:[%s797_s1] sm:$0xff]   ;;  %524 = vmatprep.subr.bf16.mxu0 %v592_v0  ;;  %v595_v4 = vld [vmem:[%s797_s1 + $0x8] sm:$0xff]   ;;  %v597_v6 = vld [vmem:[%s797_s1 + $0x10] sm:$0xff]  }
   0x3   :  { %525 = vmatpush3.bf16.msra.mxu0 %v593_v1  ;;  %v598_v7 = vld [vmem:[%s797_s1 + $0x58] sm:$0xff]   ;;  %v600_v8 = vld [vmem:[%s797_s1 + $0x80] sm:$0xff]   ;;  %v603_v10 = vld [vmem:[%s797_s1 + $0x88] sm:$0xff]  }
   0x4   :  { %526 = vmatprep.subr.bf16.mxu0 %v594_v3  ;;  %v599_v9 = vld [vmem:[%s797_s1 + $0x18] sm:$0xff]   ;;  %556 = vmatpush3.bf16.msra.mxu1 %v600_v8  ;;  %v601_v11 = vld [vmem:[%s797_s1 + $0x60] sm:$0xff]   ;;  %v606_v12 = vld [vmem:[%s797_s1 + $0x90] sm:$0xff]  }
   0x5   :  { %557 = vmatprep.subr.bf16.mxu1 %v640_v2  ;;  %v602_v13 = vld [vmem:[%s797_s1 + $0x20] sm:$0xff]   ;;  %v604_v14 = vld [vmem:[%s797_s1 + $0x68] sm:$0xff]   ;;  %v609_v15 = vld [vmem:[%s797_s1 + $0x98] sm:$0xff]  }
   0x6   :  { %v605_v17 = vld [vmem:[%s797_s1 + $0x28] sm:$0xff]   ;;  %v607_v18 = vld [vmem:[%s797_s1 + $0x70] sm:$0xff]   ;;  %v612_v19 = vld [vmem:[%s797_s1 + $0xa0] ss:$0 sps:$4 sm:$0x33]  }
   0x7   :  { %527 = vmatpush3.bf16.msra.mxu0 %v595_v4  ;;  %v729_v20 = vld [vmem:[%s796_s0] sm:$0x3f] }
   0x8   :  { %528 = vmatprep.subr.bf16.mxu0 %v596_v5  ;;  %558 = vmatpush3.bf16.msra.mxu1 %v603_v10 }
   0x9   :  { %559 = vmatprep.subr.bf16.mxu1 %v640_v2 }
   0xb   :  { %529 = vmatpush3.bf16.msra.mxu0 %v597_v6 }
   0xc   :  { %530 = vmatprep.subr.bf16.mxu0 %v598_v7  ;;  %560 = vmatpush3.bf16.msra.mxu1 %v606_v12 }
   0xd   :  { %561 = vmatprep.subr.bf16.mxu1 %v640_v2 }
   0xf   :  { %531 = vmatpush3.bf16.msra.mxu0 %v599_v9 }
  0x10   :  { %532 = vmatprep.subr.bf16.mxu0 %v601_v11 }
  0x13   :  { %533 = vmatpush3.bf16.msra.mxu0 %v602_v13 }
  0x14   :  { %534 = vmatprep.subr.bf16.mxu0 %v604_v14 }
  0x15   :  { %8 = vsyncpa [#allocation3], 0  ;;  %562 = vmatpush3.bf16.msra.mxu1 %v609_v15  ;;  %v642_v21 = vmov 1983009808   ;;  %v23_v23 = vshrl.u32 %v22_v16, 7  ;;  %v608_v24 = vld [vmem:[%s797_s1 + $0x30] sm:$0xff]   ;;  %v18_v27 = vcombine.high %v729_v20, %v729_v20 }
  0x16   :  { %v20_v22 = vunpack.c.l.s4 %v642_v21  ;;  %563 = vmatprep.subr.bf16.mxu1 %v640_v2  ;;  %v210_v25 = vsel %vm208_vm1, %v612_v19, 0  ;;  %v610_v26 = vld [vmem:[%s797_s1 + $0x78] sm:$0xff]   ;;  %vm204_vm2 = vcmask 556032   ;;  %v297_v37 = vld [vmem:[%s798_s2 + $0x8] sm:$0xff]  ;;  %v300_v38 = vld [vmem:[%s798_s2 + $0x20] sm:$0x1] }
  0x17   :  { %535 = vmatpush3.bf16.msra.mxu0 %v605_v17  ;;  %v611_v30 = vld [vmem:[%s797_s1 + $0x38] sm:$0xff]   ;;  %vm306_vm3 = vcmask 1040384   ;;  %v576_v39 = vpack.c.bf16 %v300_v38, %v297_v37  ;;  %v296_v40 = vld [vmem:[%s798_s2] sm:$0xff]  ;;  %vm643_vm4 = vmmov 1   ;;  %v644_v44 = vmov 0.0|0.0   ;;  %v298_v55 = vld [vmem:[%s798_s2 + $0x10] sm:$0xff] }
  0x18   :  { %536 = vmatprep.subr.bf16.mxu0 %v607_v18  ;;  %v21_v28 = vunpack.c.0.s8 %v20_v22  ;;  %v299_v41 = vld [vmem:[%s798_s2 + $0x18] sm:$0x1]  ;;  %vm762_vm5 = vmpackc.low %vm306_vm3, %vm643_vm4  ;;  %v301_v56 = vld [vmem:[%s798_s2 + $0x28] sm:$0x1]  ;;  %vm302_vm6 = vcmask 72704   ;;  %vm478_vm8 = vcmask 1043458  }
  0x19   :  { %564 = vmatpush3.bf16.msra.mxu1 %v210_v25  ;;  %v579_v43 = vpack.c.bf16 %v299_v41, %v296_v40  ;;  %v583_v57 = vpack.c.bf16 %v301_v56, %v298_v55  ;;  %vm479_vm9 = vmor %vm478_vm8, %vm208_vm1  ;;  %vm480_vm10 = vcmask 553988   ;;  %s645_s2 = smov [#allocation2]  }
  0x1a   :  { %v741_v29 = vsub.s32 %v21_v28, %v23_v23  ;;  %578 = vmatprep.subr.msk.bf16.mxu1 %vm762_vm5, %v576_v39  ;;  %s489_s12 = sshll.u32 %s645_s2, 4  ;;  %vm481_vm11 = vmor %vm480_vm10, %vm479_vm9  ;;  %s490_s12 = int_to_ptr.vmem [resolvable:$true] %s489_s12 }
  0x1b   :  { %537 = vmatpush3.bf16.msra.mxu0 %v608_v24  ;;  %s616_s13 = scalar_lea.vmem %s490_s12, 96  ;;  %p621_p1 = scmp.lt.s32.totalorder %s490_s12, %s490_s12 }
  0x1c   :  { %538 = vmatprep.subr.bf16.mxu0 %v610_v26  ;;  %v25_v31 = vrot.slane %v729_v20, %v741_v29  ;;  %v32_v32 = vrot.slane %v18_v27, %v741_v29  ;;  %p617_p0 = scmp.ne.s32.totalorder %s490_s12, %s616_s13  ;;  %p622_p2 = scmp.lt.s32.totalorder %s616_s13, %s616_s13 }
  0x1e   :  { %v33_v33 = vcombine.high %v25_v31, %v25_v31  ;;  %v39_v34 = vpack.c.bf16 %v32_v32, %v32_v32  ;;  %v37_v35 = vpack.c.bf16 %v25_v31, %v25_v31  ;;  %p623_p3 = por %p622_p2, %p621_p1 }
  0x1f   :  { %539 = vmatpush3.bf16.msra.mxu0 %v611_v30 }
  0x20   :  { %v38_v36 = vpack.c.bf16 %v33_v33, %v33_v33  ;;  %566 = vmatmul.mubr.msk.bf16.vlgmr.msra.gmra.mrb[0].mxu1 %vm204_vm2, %v39_v34  ;;  %p624_p4 = pnand %p623_p3, %p617_p0 }
  0x21   :  { %380 = vmatprep.mubr.f32.mxu1 %v640_v2  ;;  %581 = vmatpush1.bf16.msk.msra.mxu1 %vm762_vm5, %v579_v43 }
  0x22   :  { %244 = vmatprep.mubr.bf16.mxu0 %v38_v36  ;;  %582 = vmatprep.subr.bf16.mxu1 %v644_v44 }
  0x23   :  { %245 = vmatmul.mubr.bf16.vlgmr.msra.gmra.mrb[0].mxu0 %v37_v35 }
  0xf3   :  { %v286_v45 = vpop.f32.mrb[0].mxu1 }
  0xf4   :  { %v567_v46 = vpop.f32.mrb[1].mxu1 }
  0xf5   :  { %v289_v47 = vpop.f32.mrb[2].mxu1 }
  0xf6   :  { %v540_v48 = vpop.f32.mrb[0].mxu0  ;;  %v568_v49 = vpop.f32.mrb[3].mxu1 }
  0xf7   :  { %v541_v50 = vpop.f32.mrb[1].mxu0 }
  0xf8   :  { %v542_v51 = vadd.f32 %v541_v50, %v540_v48  ;;  %v543_v52 = vpop.f32.mrb[2].mxu0 }
  0xf9   :  { %v544_v53 = vpop.f32.mrb[3].mxu0 }
  0xfa   :  { %v287_v54 = vadd.f32 %v542_v51, %v286_v45 }
  0xfc   :  { %614 = vrcp.f32 %v287_v54  ;;  %vm292_vm7 = vcmp.eq.f32.partialorder %v287_v54, 0.0 }
 0x106   :  { %v615_v58 = vpop.eup %614 }
 0x107   :  { %v295_v59 = vsel %vm292_vm7, 0.0, %v615_v58 }
 0x108   :  { %521 = vmatmul.mubr.msk.f32.vlgmr.msra.gmra.mrb[4].mxu1 %vm302_vm6, %v295_v59 }
 0x109   :  { %585 = vmatpush3.bf16.msk.msra.mxu1 %vm762_vm5, %v583_v57  ;;  %573 = vmatprep.mubr.msk.f32.mxu1 %vm641_vm0, %v640_v2 }
 0x10c   :  { %574 = vmatmul.mubr.msk.f32.vlgmr.msra.gmra.mrb[6].mxu1 %vm302_vm6, %v295_v59 }
 0x1db   :  { %v382_v60 = vpop.f32.mrb[4].mxu1 }
 0x1dc   :  { %v384_v61 = vpop.f32.mrb[5].mxu1 }
 0x1dd   :  { %v460_v62 = vcombine.low %v382_v60, %v384_v61 }
 0x1df   :  { %v467_v63 = vrot.slane %v460_v62, %v741_v29  ;;  %v453_v0 = vpop.f32.mrb[6].mxu1 }
 0x1e0   :  { %v474_v1 = vrot.slane %v453_v0, %v741_v29  ;;  %v575_v3 = vpop.f32.mrb[7].mxu1 }
 0x1e2   :  { %v475_v4 = vcombine.low %v467_v63, %v474_v1 }
 0x1e4   :  { %v477_v2 = vmul.f32 %v475_v4, %v729_v20 }
 0x1e6   :  { %482 = vst.msk [vmem:[#allocation2] sm:$0x3f] %vm481_vm11, %v477_v2 }
 0x1e7   :  { %627 = shalt.err (!%p624_p4)
}
 0x1e8   :  { %s628_s16 = scalar_lea.hbm %s799_s3, 96 }
 0x1e9   :  { %p629_p5 = scmp.ne.s32.totalorder %s799_s3, %s628_s16  ;;  %p632_p6 = scmp.lt.u32.totalorder %s628_s16, %s799_s3 }
 0x1eb   :  { %p634_p7 = pnand %p632_p6, %p629_p5 }
 0x1ed   :  { %637 = shalt.err (!%p634_p7)
}
 0x1ee   :  { %492 = dma.vmem_to_hbm [thread:$0]  %s490_s12, 96, %s799_s3, [#allocation3]  }
 0x1ef   :  { %638 = dma.done.wait [#allocation3], 96  }
 0x1f0   :  { %639 = vsyncadd [#allocation3], 4294967200 }
 0x1f1   :  { %496 = vsyncpa [#allocation3], 1 }

</bundles_post_ra>
